<compile_context>
chip_gen: v7x
topology: tpu7x:2x2x1
jax: 0.10.0
libtpu: 0.0.40
codegen_flags: <defaults>
</compile_context>

<pallas_src>
import jax
import jax.numpy as jnp
from jax.experimental import pallas as pl
from jax.experimental.pallas import tpu as pltpu


def _pool_matrix(n_in: int, n_out: int, kernel_size: int, stride: int, padding: int):
    """Binary matrix P[i, o] = 1 iff input index i falls in pooling window o."""
    i = jnp.arange(n_in)[:, None]
    o = jnp.arange(n_out)[None, :]
    start = o * stride - padding
    mask = (i >= start) & (i < start + kernel_size)
    return mask.astype(jnp.float32)


def _channels_per_step(nc: int, d: int, do: int) -> int:
    """(n, c) channels processed per grid step.

    Targets B*D ~= 256 rows for the main matmul (fills the MXU M dimension on
    v6e/v7x, two pushes on v5e) while keeping every block's second-minor
    dimension a multiple of 8 (Mosaic tiling rule).  Falls back to one
    full-extent block (always legal) if no divisor qualifies.  No forced
    multi-step split: at these problem sizes per-step pipeline overhead
    dominates, so fewer steps is better even on 2-TC chips.
    """
    target = max(1, 256 // max(d, 1))
    valid = [b for b in range(1, nc + 1)
             if nc % b == 0 and b <= target
             and (b * d) % 8 == 0 and (b * do) % 8 == 0]
    return max(valid) if valid else nc


def avg_pool3d(x: jax.Array, kernel_size: int = 3, stride: int = 2, padding: int = 1):
    N, C, D, H, W = x.shape

    def out_dim(n):
        return (n + 2 * padding - kernel_size) // stride + 1

    Do, Ho, Wo = out_dim(D), out_dim(H), out_dim(W)
    NC, HW, HoWo = N * C, H * W, Ho * Wo

    B = _channels_per_step(NC, D, Do)
    num_steps = NC // B

    PW = _pool_matrix(W, Wo, kernel_size, stride, padding)   # (W,  Wo)
    PH = _pool_matrix(H, Ho, kernel_size, stride, padding)   # (H,  Ho)
    PD = _pool_matrix(D, Do, kernel_size, stride, padding)   # (D,  Do)

    # Fused H/W pooling matrix, exactly 0/1, kept in the activation dtype
    # (0/1 is exact in bf16 -> fast bf16 MXU path; exact products for f32).
    M_hw = jnp.einsum('hH,wW->hwHW', PH, PW).reshape(HW, HoWo).astype(x.dtype)

    # Block-diagonal D-pooling matrix for the B channels of one block.
    # Exactly 0/1, f32 (it multiplies the f32 accumulator `y`).
    PDblk = jnp.kron(jnp.eye(B, dtype=jnp.float32), PD.T)    # (B*Do, B*D)

    scale = 1.0 / float(kernel_size ** 3)   # count_include_pad=True

    # Free trace-time reshape; the kernel body never reshapes.
    x2 = x.reshape(NC * D, HW)

    def kernel(x_ref, mhw_ref, pdblk_ref, o_ref):
        # Pool H and W together: one MXU matmul, M = B*D rows, f32 accumulation.
        y = jnp.dot(x_ref[...], mhw_ref[...], preferred_element_type=jnp.float32)
        # Pool D for all B channels at once (block-diagonal 0/1 matrix).
        z = jnp.dot(pdblk_ref[...], y, preferred_element_type=jnp.float32)
        # Uniform 1/k^3 scale applied once on the VPU (co-issues with stores).
        o_ref[...] = (z * scale).astype(o_ref.dtype)

    itemsize = jnp.dtype(x.dtype).itemsize
    step_bytes = (2 * B * D * HW * itemsize            # input block (double-buffered)
                  + 2 * HW * HoWo * itemsize           # M_hw
                  + 2 * (B * Do) * (B * D) * 4         # PDblk (f32)
                  + 2 * (B * Do) * HoWo * itemsize     # output block
                  + B * D * HoWo * 4                   # y (f32 intermediate)
                  + B * Do * HoWo * 4)                 # z (f32 intermediate)
    vmem_limit = int(min(max(4 * step_bytes, 16 << 20), 32 << 20))

    flops = (2 * NC * D * HW * HoWo                    # H/W pooling matmul
             + 2 * num_steps * (B * Do) * (B * D) * HoWo   # D pooling matmul
             + NC * Do * HoWo)                         # final scale
    bytes_accessed = (NC * D * HW * itemsize           # input
                      + NC * Do * HoWo * itemsize      # output
                      + HW * HoWo * itemsize           # M_hw
                      + (B * Do) * (B * D) * 4)        # PDblk

    out = pl.pallas_call(
        kernel,
        out_shape=jax.ShapeDtypeStruct((NC * Do, HoWo), x.dtype),
        grid=(num_steps,),
        in_specs=[
            pl.BlockSpec((B * D, HW), lambda i: (i, 0)),
            pl.BlockSpec((HW, HoWo), lambda i: (0, 0)),       # constant, DMA'd once
            pl.BlockSpec((B * Do, B * D), lambda i: (0, 0)),  # constant, DMA'd once
        ],
        out_specs=pl.BlockSpec((B * Do, HoWo), lambda i: (i, 0)),
        compiler_params=pltpu.CompilerParams(
            dimension_semantics=(("parallel",) if num_steps > 1 else ("arbitrary",)),
            vmem_limit_bytes=vmem_limit),
        cost_estimate=pl.CostEstimate(
            flops=flops, transcendentals=0, bytes_accessed=bytes_accessed),
    )(x2, M_hw, PDblk)

    # (NC*Do, Ho*Wo) row-major is bit-identical to (N, C, Do, Ho, Wo).
    return out.reshape(N, C, Do, Ho, Wo)


def _reference_avg_pool3d(x, kernel_size=3, stride=2, padding=1):
    """Pure-JAX reference (matches torch.nn.AvgPool3d with count_include_pad=True)."""
    summed = jax.lax.reduce_window(
        x, 0.0, jax.lax.add,
        window_dimensions=(1, 1, kernel_size, kernel_size, kernel_size),
        window_strides=(1, 1, stride, stride, stride),
        padding=((0, 0), (0, 0),
                 (padding, padding), (padding, padding), (padding, padding)),
    )
    return summed / float(kernel_size ** 3)


if __name__ == "__main__":
    key = jax.random.PRNGKey(0)
    N, C, D, H, W = 2, 4, 16, 16, 16
    x = jax.random.normal(key, (N, C, D, H, W), dtype=jnp.float32)

    out = avg_pool3d(x, kernel_size=3, stride=2, padding=1)
    out = jax.block_until_ready(out)

    ref = _reference_avg_pool3d(x, kernel_size=3, stride=2, padding=1)
    assert out.shape == (N, C, 8, 8, 8), out.shape
    assert jnp.allclose(out, ref, atol=1e-5, rtol=1e-5), "mismatch vs reference"

    print("KERNEL_OK")
</pallas_src>

<mosaic_0001>
module attributes {stable_mosaic.version = 11 : i64} {
  func.func @kernel(%arg0: i32, %arg1: memref<128x256xf32, #tpu.memory_space<vmem>>, %arg2: memref<256x64xf32, #tpu.memory_space<vmem>>, %arg3: memref<64x128xf32, #tpu.memory_space<vmem>>, %arg4: memref<64x64xf32, #tpu.memory_space<vmem>>) attributes {dimension_semantics = [#tpu.dimension_semantics<arbitrary>], iteration_bounds = array<i64: 1>, scalar_prefetch = 0 : i64, scratch_operands = 0 : i64, tpu.core_type = #tpu.core_type<tc>, window_params = [{transform_indices = @transform_0, window_bounds = array<i64: 128, 256>}, {pipeline_mode = #tpu.pipeline_mode<synchronous>, transform_indices = @transform_1, window_bounds = array<i64: 256, 64>}, {pipeline_mode = #tpu.pipeline_mode<synchronous>, transform_indices = @transform_2, window_bounds = array<i64: 64, 128>}, {transform_indices = @transform_3, window_bounds = array<i64: 64, 64>}]} {
    %c0 = arith.constant 0 : index
    %c0_0 = arith.constant 0 : index
    %0 = vector.load %arg1[%c0, %c0_0] : memref<128x256xf32, #tpu.memory_space<vmem>>, vector<128x256xf32>
    %c0_1 = arith.constant 0 : index
    %c0_2 = arith.constant 0 : index
    %1 = vector.load %arg2[%c0_1, %c0_2] : memref<256x64xf32, #tpu.memory_space<vmem>>, vector<256x64xf32>
    %cst = arith.constant dense<0.000000e+00> : vector<128x64xf32>
    %2 = tpu.matmul %0, %1, %cst {dimension_numbers = #tpu.dot_dimension_numbers<[1], [0], [0], [1], [0, 0, 1, 1], [], []>} : vector<128x256xf32>, vector<256x64xf32>, vector<128x64xf32> -> vector<128x64xf32>
    %c0_3 = arith.constant 0 : index
    %c0_4 = arith.constant 0 : index
    %3 = vector.load %arg3[%c0_3, %c0_4] : memref<64x128xf32, #tpu.memory_space<vmem>>, vector<64x128xf32>
    %cst_5 = arith.constant dense<0.000000e+00> : vector<64x64xf32>
    %4 = tpu.matmul %3, %2, %cst_5 {dimension_numbers = #tpu.dot_dimension_numbers<[1], [0], [0], [1], [0, 0, 1, 1], [], []>} : vector<64x128xf32>, vector<128x64xf32>, vector<64x64xf32> -> vector<64x64xf32>
    %cst_6 = arith.constant 0.0370370373 : f32
    %5 = vector.broadcast %cst_6 : f32 to vector<64x64xf32>
    %6 = arith.mulf %4, %5 : vector<64x64xf32>
    %c0_7 = arith.constant 0 : index
    %c0_8 = arith.constant 0 : index
    %7 = vector.load %arg4[%c0_7, %c0_8] : memref<64x64xf32, #tpu.memory_space<vmem>>, vector<64x64xf32>
    tpu.vector_store %arg4[%c0_7, %c0_8], %6 {strides = array<i32>} : memref<64x64xf32, #tpu.memory_space<vmem>>, vector<64x64xf32>,
    return
  }
  func.func @transform_0(%arg0: i32) -> (i32, i32) {
    %c0_i32 = arith.constant 0 : i32
    %c0_i32_0 = arith.constant 0 : i32
    return %arg0, %c0_i32 : i32, i32
  }
  func.func @transform_1(%arg0: i32) -> (i32, i32) {
    %c0_i32 = arith.constant 0 : i32
    %c0_i32_0 = arith.constant 0 : i32
    %c0_i32_1 = arith.constant 0 : i32
    return %c0_i32, %c0_i32_0 : i32, i32
  }
  func.func @transform_2(%arg0: i32) -> (i32, i32) {
    %c0_i32 = arith.constant 0 : i32
    %c0_i32_0 = arith.constant 0 : i32
    %c0_i32_1 = arith.constant 0 : i32
    return %c0_i32, %c0_i32_0 : i32, i32
  }
  func.func @transform_3(%arg0: i32) -> (i32, i32) {
    %c0_i32 = arith.constant 0 : i32
    %c0_i32_0 = arith.constant 0 : i32
    return %arg0, %c0_i32 : i32, i32
  }
}

</mosaic_0001>

<bundles_post_ra>
// kernel: tpu_custom_call.1
= control target key start
LH: loop header
LB: loop body
LE: loop exit
PB: predicated region body
PF: predicated region fallthrough
CT: control target
= control target key end

     0   :  { %s868_s0 = inlined_call_operand.vmem [shape: f32[128,256], index: 0, kind: input, shape index: {}]   ;;  %s869_s1 = inlined_call_operand.vmem [shape: f32[256,64], index: 1, kind: input, shape index: {}]   ;;  %s870_s2 = inlined_call_operand.vmem [shape: f32[64,128], index: 2, kind: input, shape index: {}]   ;;  %s871_s3 = inlined_call_operand.hbm [shape: f32[64,64], index: 3, kind: output, shape index: {}]  }
   0x1   :  { %v63_v0 = vld [vmem:[%s869_s1 + $0x80] sm:$0xff]  ;;  %v64_v1 = vld [vmem:[%s869_s1 + $0x88] sm:$0xff]  ;;  %v65_v5 = vld [vmem:[%s869_s1 + $0x90] sm:$0xff] }
   0x2   :  { %v47_v2 = vld [vmem:[%s869_s1] sm:$0xff]  ;;  %v518_v3 = vpack.c.bf16 %v64_v1, %v63_v0  ;;  %v48_v4 = vld [vmem:[%s869_s1 + $0x8] sm:$0xff]  ;;  %v66_v6 = vld [vmem:[%s869_s1 + $0x98] sm:$0xff] }
   0x3   :  { %v520_v7 = vpack.c.bf16 %v48_v4, %v47_v2  ;;  %v522_v8 = vpack.c.bf16 %v66_v6, %v65_v5  ;;  %v49_v9 = vld [vmem:[%s869_s1 + $0x10] sm:$0xff]  ;;  %v50_v10 = vld [vmem:[%s869_s1 + $0x18] sm:$0xff]  ;;  %v67_v11 = vld [vmem:[%s869_s1 + $0xa0] sm:$0xff] }
   0x4   :  { %519 = vmatprep.subr.bf16.mxu0 %v518_v3  ;;  %v68_v12 = vld [vmem:[%s869_s1 + $0xa8] sm:$0xff]  ;;  %v524_v13 = vpack.c.bf16 %v50_v10, %v49_v9  ;;  %v51_v15 = vld [vmem:[%s869_s1 + $0x20] sm:$0xff]  ;;  %v69_v17 = vld [vmem:[%s869_s1 + $0xb0] sm:$0xff] }
   0x5   :  { %521 = vmatpush3.bf16.msra.mxu0 %v520_v7  ;;  %v526_v14 = vpack.c.bf16 %v68_v12, %v67_v11  ;;  %v52_v16 = vld [vmem:[%s869_s1 + $0x28] sm:$0xff]  ;;  %v70_v18 = vld [vmem:[%s869_s1 + $0xb8] sm:$0xff]  ;;  %v53_v21 = vld [vmem:[%s869_s1 + $0x30] sm:$0xff] }
   0x6   :  { %523 = vmatprep.subr.bf16.mxu0 %v522_v8  ;;  %v528_v19 = vpack.c.bf16 %v52_v16, %v51_v15  ;;  %v530_v20 = vpack.c.bf16 %v70_v18, %v69_v17  ;;  %v54_v22 = vld [vmem:[%s869_s1 + $0x38] sm:$0xff]  ;;  %v71_v23 = vld [vmem:[%s869_s1 + $0xc0] sm:$0xff]  ;;  %v72_v24 = vld [vmem:[%s869_s1 + $0xc8] sm:$0xff] }
   0x7   :  { %v16_v25 = vld [vmem:[%s868_s0 + $0x8] sm:$0xff]  ;;  %v532_v26 = vpack.c.bf16 %v54_v22, %v53_v21  ;;  %v534_v27 = vpack.c.bf16 %v72_v24, %v71_v23  ;;  %v55_v28 = vld [vmem:[%s869_s1 + $0x40] sm:$0xff]  ;;  %v73_v30 = vld [vmem:[%s869_s1 + $0xd0] sm:$0xff] }
   0x8   :  { %143 = vmatprep.mubr.f32.mxu0 %v16_v25  ;;  %v56_v29 = vld [vmem:[%s869_s1 + $0x48] sm:$0xff]  ;;  %v74_v31 = vld [vmem:[%s869_s1 + $0xd8] sm:$0xff]  ;;  %v57_v34 = vld [vmem:[%s869_s1 + $0x50] sm:$0xff] }
   0x9   :  { %525 = vmatpush3.bf16.msra.mxu0 %v524_v13  ;;  %v536_v32 = vpack.c.bf16 %v56_v29, %v55_v28  ;;  %v538_v33 = vpack.c.bf16 %v74_v31, %v73_v30  ;;  %v58_v35 = vld [vmem:[%s869_s1 + $0x58] sm:$0xff]  ;;  %v75_v36 = vld [vmem:[%s869_s1 + $0xe0] sm:$0xff]  ;;  %v76_v37 = vld [vmem:[%s869_s1 + $0xe8] sm:$0xff] }
   0xa   :  { %527 = vmatprep.subr.bf16.mxu0 %v526_v14  ;;  %v540_v38 = vpack.c.bf16 %v58_v35, %v57_v34  ;;  %v542_v39 = vpack.c.bf16 %v76_v37, %v75_v36  ;;  %v59_v40 = vld [vmem:[%s869_s1 + $0x60] sm:$0xff]  ;;  %v60_v41 = vld [vmem:[%s869_s1 + $0x68] sm:$0xff] }
   0xd   :  { %529 = vmatpush3.bf16.msra.mxu0 %v528_v19 }
   0xe   :  { %531 = vmatprep.subr.bf16.mxu0 %v530_v20 }
  0x11   :  { %533 = vmatpush3.bf16.msra.mxu0 %v532_v26 }
  0x12   :  { %535 = vmatprep.subr.bf16.mxu0 %v534_v27 }
  0x15   :  { %537 = vmatpush3.bf16.msra.mxu0 %v536_v32 }
  0x16   :  { %539 = vmatprep.subr.bf16.mxu0 %v538_v33 }
  0x17   :  { %8 = vsyncpa [#allocation3], 0  ;;  %v77_v42 = vld [vmem:[%s869_s1 + $0xf0] sm:$0xff]  ;;  %v78_v43 = vld [vmem:[%s869_s1 + $0xf8] sm:$0xff]  ;;  %v544_v44 = vpack.c.bf16 %v60_v41, %v59_v40  ;;  %vm345_vm0 = vcmask 523264  }
  0x18   :  { %v546_v45 = vpack.c.bf16 %v78_v43, %v77_v42  ;;  %v61_v46 = vld [vmem:[%s869_s1 + $0x70] sm:$0xff]  ;;  %v62_v47 = vld [vmem:[%s869_s1 + $0x78] sm:$0xff]  ;;  %v15_v49 = vld [vmem:[%s868_s0] sm:$0xff] }
  0x19   :  { %541 = vmatpush3.bf16.msra.mxu0 %v540_v38  ;;  %v548_v48 = vpack.c.bf16 %v62_v47, %v61_v46  ;;  %v18_v50 = vld [vmem:[%s868_s0 + $0x18] sm:$0xff]  ;;  %v17_v51 = vld [vmem:[%s868_s0 + $0x10] sm:$0xff]  ;;  %v20_v52 = vld [vmem:[%s868_s0 + $0x28] sm:$0xff] }
  0x1a   :  { %543 = vmatprep.subr.bf16.mxu0 %v542_v39  ;;  %v19_v53 = vld [vmem:[%s868_s0 + $0x20] sm:$0xff]  ;;  %v22_v54 = vld [vmem:[%s868_s0 + $0x38] sm:$0xff]  ;;  %v21_v55 = vld [vmem:[%s868_s0 + $0x30] sm:$0xff] }
  0x1b   :  { %v24_v56 = vld [vmem:[%s868_s0 + $0x48] sm:$0xff]  ;;  %v23_v57 = vld [vmem:[%s868_s0 + $0x40] sm:$0xff]  ;;  %v26_v58 = vld [vmem:[%s868_s0 + $0x58] sm:$0xff] }
  0x1c   :  { %v25_v59 = vld [vmem:[%s868_s0 + $0x50] sm:$0xff]  ;;  %v28_v60 = vld [vmem:[%s868_s0 + $0x68] sm:$0xff]  ;;  %v27_v61 = vld [vmem:[%s868_s0 + $0x60] sm:$0xff] }
  0x1d   :  { %545 = vmatpush3.bf16.msra.mxu0 %v544_v44  ;;  %v30_v62 = vld [vmem:[%s868_s0 + $0x78] sm:$0xff]  ;;  %v29_v63 = vld [vmem:[%s868_s0 + $0x70] sm:$0xff]  ;;  %v32_v0 = vld [vmem:[%s868_s0 + $0x88] sm:$0xff] }
  0x1e   :  { %547 = vmatprep.subr.bf16.mxu0 %v546_v45  ;;  %v31_v1 = vld [vmem:[%s868_s0 + $0x80] sm:$0xff]  ;;  %v34_v2 = vld [vmem:[%s868_s0 + $0x98] sm:$0xff]  ;;  %v33_v3 = vld [vmem:[%s868_s0 + $0x90] sm:$0xff] }
  0x1f   :  { %v36_v4 = vld [vmem:[%s868_s0 + $0xa8] sm:$0xff]  ;;  %v35_v5 = vld [vmem:[%s868_s0 + $0xa0] sm:$0xff]  ;;  %v38_v6 = vld [vmem:[%s868_s0 + $0xb8] sm:$0xff] }
  0x20   :  { %v37_v7 = vld [vmem:[%s868_s0 + $0xb0] sm:$0xff]  ;;  %v40_v8 = vld [vmem:[%s868_s0 + $0xc8] sm:$0xff]  ;;  %v39_v9 = vld [vmem:[%s868_s0 + $0xc0] sm:$0xff] }
  0x21   :  { %549 = vmatpush3.bf16.msra.mxu0 %v548_v48  ;;  %v42_v10 = vld [vmem:[%s868_s0 + $0xd8] sm:$0xff]  ;;  %v41_v11 = vld [vmem:[%s868_s0 + $0xd0] sm:$0xff]  ;;  %v44_v12 = vld [vmem:[%s868_s0 + $0xe8] sm:$0xff] }
  0x22   :  { %v43_v13 = vld [vmem:[%s868_s0 + $0xe0] sm:$0xff]  ;;  %v46_v14 = vld [vmem:[%s868_s0 + $0xf8] sm:$0xff]  ;;  %v45_v15 = vld [vmem:[%s868_s0 + $0xf0] sm:$0xff] }
  0x23   :  { %v224_v16 = vld [vmem:[%s870_s2] sm:$0xff] }
  0x24   :  { %144 = vmatmul.mubr.f32.vlgmr.msra.gmra.mrb[0].mxu0 %v15_v49  ;;  %506 = vmatprep.mubr.f32.mxu1 %v224_v16 }
  0x25   :  { %148 = vmatprep.mubr.f32.mxu0 %v18_v50 }
  0x28   :  { %149 = vmatmul.mubr.f32.gmra.mrb[2].mxu0 %v17_v51 }
  0x29   :  { %153 = vmatprep.mubr.f32.mxu0 %v20_v52 }
  0x2c   :  { %154 = vmatmul.mubr.f32.gmra.mrb[4].mxu0 %v19_v53 }
  0x2d   :  { %158 = vmatprep.mubr.f32.mxu0 %v22_v54 }
  0x30   :  { %159 = vmatmul.mubr.f32.gmra.mrb[6].mxu0 %v21_v55 }
  0x31   :  { %163 = vmatprep.mubr.f32.mxu0 %v24_v56 }
  0x34   :  { %164 = vmatmul.mubr.f32.gmra.mrb[8].mxu0 %v23_v57 }
  0x35   :  { %168 = vmatprep.mubr.f32.mxu0 %v26_v58 }
  0x38   :  { %169 = vmatmul.mubr.f32.gmra.mrb[10].mxu0 %v25_v59 }
  0x39   :  { %173 = vmatprep.mubr.f32.mxu0 %v28_v60 }
  0x3c   :  { %174 = vmatmul.mubr.f32.gmra.mrb[12].mxu0 %v27_v61 }
  0x3d   :  { %178 = vmatprep.mubr.f32.mxu0 %v30_v62 }
  0x40   :  { %179 = vmatmul.mubr.f32.gmra.mrb[14].mxu0 %v29_v63 }
  0x41   :  { %183 = vmatprep.mubr.f32.mxu0 %v32_v0 }
  0x44   :  { %184 = vmatmul.mubr.f32.gmra.mrb[16].mxu0 %v31_v1 }
  0x45   :  { %188 = vmatprep.mubr.f32.mxu0 %v34_v2 }
  0x48   :  { %189 = vmatmul.mubr.f32.gmra.mrb[18].mxu0 %v33_v3 }
  0x49   :  { %193 = vmatprep.mubr.f32.mxu0 %v36_v4 }
  0x4c   :  { %194 = vmatmul.mubr.f32.gmra.mrb[20].mxu0 %v35_v5 }
  0x4d   :  { %198 = vmatprep.mubr.f32.mxu0 %v38_v6 }
  0x50   :  { %199 = vmatmul.mubr.f32.gmra.mrb[22].mxu0 %v37_v7 }
  0x51   :  { %203 = vmatprep.mubr.f32.mxu0 %v40_v8 }
  0x54   :  { %204 = vmatmul.mubr.f32.gmra.mrb[24].mxu0 %v39_v9  ;;  %v225_v9 = vld [vmem:[%s870_s2 + $0x8] sm:$0xff] }
  0x55   :  { %208 = vmatprep.mubr.f32.mxu0 %v42_v10  ;;  %v226_v10 = vld [vmem:[%s870_s2 + $0x10] sm:$0xff] }
  0x58   :  { %209 = vmatmul.mubr.f32.gmra.mrb[26].mxu0 %v41_v11  ;;  %v227_v11 = vld [vmem:[%s870_s2 + $0x18] sm:$0xff] }
  0x59   :  { %213 = vmatprep.mubr.f32.mxu0 %v44_v12  ;;  %v228_v12 = vld [vmem:[%s870_s2 + $0x20] sm:$0xff] }
  0x5c   :  { %214 = vmatmul.mubr.f32.gmra.mrb[28].mxu0 %v43_v13  ;;  %v229_v13 = vld [vmem:[%s870_s2 + $0x28] sm:$0xff] }
  0x5d   :  { %218 = vmatprep.mubr.f32.mxu0 %v46_v14  ;;  %v230_v14 = vld [vmem:[%s870_s2 + $0x30] sm:$0xff] }
  0x60   :  { %219 = vmatmul.mubr.f32.gmra.mrb[30].mxu0 %v45_v15  ;;  %v231_v15 = vld [vmem:[%s870_s2 + $0x38] sm:$0xff]  ;;  %s609_s2 = smov [#allocation2]  }
  0x61   :  { %s359_s17 = sshll.u32 %s609_s2, 4  ;;  %s360_s17 = int_to_ptr.vmem [resolvable:$true] %s359_s17 }
  0x62   :  { %s585_s18 = scalar_lea.vmem %s360_s17, 1024  ;;  %p590_p1 = scmp.lt.s32.totalorder %s360_s17, %s360_s17 }
  0x63   :  { %p586_p0 = scmp.ne.s32.totalorder %s360_s17, %s585_s18  ;;  %p591_p2 = scmp.lt.s32.totalorder %s585_s18, %s585_s18 }
  0x65   :  { %p592_p3 = por %p591_p2, %p590_p1 }
  0x67   :  { %p593_p4 = pnand %p592_p3, %p586_p0 }
  0xf7   :  { %v402_v17 = vpop.f32.mrb[0].mxu0 }
  0xf8   :  { %v403_v18 = vpop.f32.mrb[1].mxu0 }
  0xf9   :  { %v404_v19 = vadd.f32 %v403_v18, %v402_v17 }
  0xfb   :  { %v405_v20 = vpop.f32.mrb[2].mxu0 }
  0xfc   :  { %v406_v21 = vpop.f32.mrb[3].mxu0 }
  0xfd   :  { %v407_v22 = vadd.f32 %v406_v21, %v405_v20 }
  0xff   :  { %v408_v23 = vpop.f32.mrb[4].mxu0  ;;  %v550_v24 = vpack.c.bf16 %v407_v22, %v404_v19 }
 0x100   :  { %v409_v25 = vpop.f32.mrb[5].mxu0 }
 0x101   :  { %v410_v26 = vadd.f32 %v409_v25, %v408_v23  ;;  %551 = vmatprep.subr.bf16.mxu1 %v550_v24 }
 0x102   :  { %553 = vmatpush3.bf16.msra.mxu1 %v550_v24 }
 0x103   :  { %v411_v27 = vpop.f32.mrb[6].mxu0 }
 0x104   :  { %v412_v28 = vpop.f32.mrb[7].mxu0 }
 0x105   :  { %v413_v29 = vadd.f32 %v412_v28, %v411_v27 }
 0x107   :  { %v554_v30 = vpack.c.bf16 %v413_v29, %v410_v26  ;;  %v414_v31 = vpop.f32.mrb[8].mxu0 }
 0x108   :  { %v415_v32 = vpop.f32.mrb[9].mxu0 }
 0x109   :  { %v416_v33 = vadd.f32 %v415_v32, %v414_v31  ;;  %555 = vmatprep.subr.bf16.mxu1 %v554_v30 }
 0x10a   :  { %557 = vmatpush3.bf16.msra.mxu1 %v554_v30 }
 0x10b   :  { %v417_v34 = vpop.f32.mrb[10].mxu0 }
 0x10c   :  { %v418_v35 = vpop.f32.mrb[11].mxu0 }
 0x10d   :  { %v419_v36 = vadd.f32 %v418_v35, %v417_v34 }
 0x10f   :  { %v558_v37 = vpack.c.bf16 %v419_v36, %v416_v33  ;;  %v420_v38 = vpop.f32.mrb[12].mxu0 }
 0x110   :  { %v421_v39 = vpop.f32.mrb[13].mxu0 }
 0x111   :  { %v422_v40 = vadd.f32 %v421_v39, %v420_v38  ;;  %559 = vmatprep.subr.bf16.mxu1 %v558_v37 }
 0x112   :  { %561 = vmatpush3.bf16.msra.mxu1 %v558_v37 }
 0x113   :  { %v423_v41 = vpop.f32.mrb[14].mxu0 }
 0x114   :  { %v424_v42 = vpop.f32.mrb[15].mxu0 }
 0x115   :  { %v425_v43 = vadd.f32 %v424_v42, %v423_v41 }
 0x117   :  { %v562_v44 = vpack.c.bf16 %v425_v43, %v422_v40  ;;  %v426_v45 = vpop.f32.mrb[16].mxu0 }
 0x118   :  { %v427_v46 = vpop.f32.mrb[17].mxu0 }
 0x119   :  { %v428_v47 = vadd.f32 %v427_v46, %v426_v45  ;;  %563 = vmatprep.subr.bf16.mxu1 %v562_v44 }
 0x11a   :  { %565 = vmatpush3.bf16.msra.mxu1 %v562_v44 }
 0x11b   :  { %v429_v48 = vpop.f32.mrb[18].mxu0 }
 0x11c   :  { %v430_v49 = vpop.f32.mrb[19].mxu0 }
 0x11d   :  { %v431_v50 = vadd.f32 %v430_v49, %v429_v48 }
 0x11f   :  { %v566_v51 = vpack.c.bf16 %v431_v50, %v428_v47  ;;  %v432_v52 = vpop.f32.mrb[20].mxu0 }
 0x120   :  { %v433_v53 = vpop.f32.mrb[21].mxu0 }
 0x121   :  { %v434_v54 = vadd.f32 %v433_v53, %v432_v52  ;;  %567 = vmatprep.subr.bf16.mxu1 %v566_v51 }
 0x122   :  { %569 = vmatpush3.bf16.msra.mxu1 %v566_v51 }
 0x123   :  { %v435_v55 = vpop.f32.mrb[22].mxu0 }
 0x124   :  { %v436_v56 = vpop.f32.mrb[23].mxu0 }
 0x125   :  { %v437_v57 = vadd.f32 %v436_v56, %v435_v55 }
 0x127   :  { %v570_v58 = vpack.c.bf16 %v437_v57, %v434_v54  ;;  %v438_v59 = vpop.f32.mrb[24].mxu0 }
 0x128   :  { %v439_v60 = vpop.f32.mrb[25].mxu0 }
 0x129   :  { %v440_v61 = vadd.f32 %v439_v60, %v438_v59  ;;  %571 = vmatprep.subr.bf16.mxu1 %v570_v58 }
 0x12a   :  { %573 = vmatpush3.bf16.msra.mxu1 %v570_v58 }
 0x12b   :  { %v441_v62 = vpop.f32.mrb[26].mxu0 }
 0x12c   :  { %v442_v63 = vpop.f32.mrb[27].mxu0 }
 0x12d   :  { %v443_v0 = vadd.f32 %v442_v63, %v441_v62 }
 0x12f   :  { %v574_v1 = vpack.c.bf16 %v443_v0, %v440_v61  ;;  %v444_v2 = vpop.f32.mrb[28].mxu0 }
 0x130   :  { %v445_v3 = vpop.f32.mrb[29].mxu0 }
 0x131   :  { %v446_v4 = vadd.f32 %v445_v3, %v444_v2  ;;  %575 = vmatprep.subr.bf16.mxu1 %v574_v1 }
 0x132   :  { %577 = vmatpush3.bf16.msra.mxu1 %v574_v1 }
 0x133   :  { %v447_v5 = vpop.f32.mrb[30].mxu0 }
 0x134   :  { %v448_v6 = vpop.f32.mrb[31].mxu0 }
 0x135   :  { %v449_v7 = vadd.f32 %v448_v6, %v447_v5 }
 0x137   :  { %v578_v8 = vpack.c.bf16 %v449_v7, %v446_v4 }
 0x139   :  { %579 = vmatprep.subr.bf16.mxu1 %v578_v8 }
 0x13a   :  { %581 = vmatpush3.bf16.msra.mxu1 %v578_v8 }
 0x13d   :  { %507 = vmatmul.mubr.f32.vlgmr.msra.gmra.mrb[0].mxu1 %v225_v9 }
 0x13e   :  { %509 = vmatprep.mubr.f32.mxu1 %v226_v10 }
 0x141   :  { %510 = vmatmul.mubr.f32.gmra.mrb[2].mxu1 %v227_v11 }
 0x142   :  { %512 = vmatprep.mubr.f32.mxu1 %v228_v12 }
 0x145   :  { %513 = vmatmul.mubr.f32.gmra.mrb[4].mxu1 %v229_v13 }
 0x146   :  { %515 = vmatprep.mubr.f32.mxu1 %v230_v14 }
 0x149   :  { %516 = vmatmul.mubr.f32.gmra.mrb[6].mxu1 %v231_v15 }
 0x210   :  { %v508_v16 = vpop.f32.mrb[0].mxu1 }
 0x211   :  { %v338_v17 = vmul.f32 0.037037037, %v508_v16  ;;  %v298_v18 = vpop.f32.mrb[1].mxu1 }
 0x212   :  { %v337_v19 = vmul.f32 0.037037037, %v298_v18 }
 0x213   :  { %347 = vst.msk [vmem:[#allocation2 + $0x8] sm:$0xff] %vm345_vm0, %v338_v17 }
 0x214   :  { %346 = vst.msk [vmem:[#allocation2] sm:$0xff] %vm345_vm0, %v337_v19  ;;  %v511_v20 = vpop.f32.mrb[2].mxu1 }
 0x215   :  { %v340_v21 = vmul.f32 0.037037037, %v511_v20  ;;  %v308_v22 = vpop.f32.mrb[3].mxu1 }
 0x216   :  { %v339_v23 = vmul.f32 0.037037037, %v308_v22 }
 0x217   :  { %349 = vst.msk [vmem:[#allocation2 + $0x18] sm:$0xff] %vm345_vm0, %v340_v21 }
 0x218   :  { %348 = vst.msk [vmem:[#allocation2 + $0x10] sm:$0xff] %vm345_vm0, %v339_v23  ;;  %v514_v24 = vpop.f32.mrb[4].mxu1 }
 0x219   :  { %v342_v25 = vmul.f32 0.037037037, %v514_v24  ;;  %v318_v26 = vpop.f32.mrb[5].mxu1 }
 0x21a   :  { %v341_v27 = vmul.f32 0.037037037, %v318_v26 }
 0x21b   :  { %351 = vst.msk [vmem:[#allocation2 + $0x28] sm:$0xff] %vm345_vm0, %v342_v25 }
 0x21c   :  { %350 = vst.msk [vmem:[#allocation2 + $0x20] sm:$0xff] %vm345_vm0, %v341_v27  ;;  %v517_v28 = vpop.f32.mrb[6].mxu1 }
 0x21d   :  { %v344_v29 = vmul.f32 0.037037037, %v517_v28  ;;  %v328_v30 = vpop.f32.mrb[7].mxu1 }
 0x21e   :  { %v343_v31 = vmul.f32 0.037037037, %v328_v30 }
 0x21f   :  { %353 = vst.msk [vmem:[#allocation2 + $0x38] sm:$0xff] %vm345_vm0, %v344_v29 }
 0x220   :  { %352 = vst.msk [vmem:[#allocation2 + $0x30] sm:$0xff] %vm345_vm0, %v343_v31 }
 0x221   :  { %596 = shalt.err (!%p593_p4)
}
 0x222   :  { %s597_s21 = scalar_lea.hbm %s871_s3, 1024 }
 0x223   :  { %p598_p5 = scmp.ne.s32.totalorder %s871_s3, %s597_s21  ;;  %p601_p6 = scmp.lt.u32.totalorder %s597_s21, %s871_s3 }
 0x225   :  { %p603_p7 = pnand %p601_p6, %p598_p5 }
 0x227   :  { %606 = shalt.err (!%p603_p7)
}
 0x228   :  { %s610_s26 = smov 128   ;;  %s611_s27 = smov 8  }
 0x229   :  { %365 = dma.vmem_to_hbm [thread:$0]  %s360_s17, 1024, %s871_s3, [#allocation3], %s610_s26, %s610_s26, %s611_s27  }
 0x22a   :  { %607 = dma.done.wait [#allocation3], 1024  }
 0x22b   :  { %608 = vsyncadd [#allocation3], 4294966272 }
 0x22c   :  { %369 = vsyncpa [#allocation3], 1 }

</bundles_post_ra>
